<compile_context>
chip_gen: v6e
topology: v6e:2x2x1
jax: 0.10.0
libtpu: 0.0.40
codegen_flags: <defaults>
</compile_context>

<pallas_src>
import functools
import math

import numpy as np

import jax
import jax.numpy as jnp
from jax import lax
from jax.experimental import pallas as pl
from jax.experimental.pallas import tpu as pltpu


def _pow_spec(sq, p):
    """sq**p for sq >= eps > 0. Integer p stays on the VPU (square-and-multiply)."""
    p_int = int(round(p))
    if abs(p - 1.0) < 1e-12:
        return sq
    if abs(p - p_int) < 1e-12 and 1 <= p_int <= 16:
        result = None
        base = sq
        e = p_int
        while e:
            if e & 1:
                result = base if result is None else result * base
            e >>= 1
            if e:
                base = base * base
        return result
    return sq ** p  # non-integer exponent -> EUP exp/log path


def _fold_to_8x128(v, sub, hwb):
    """Reduce a (sub, hwb) value to an (8, 128) partial with cheap aligned slices."""
    acc = v[:, 0:128]
    for i in range(1, hwb // 128):
        acc = acc + v[:, i * 128:(i + 1) * 128]
    r = acc[0:8, :]
    for j in range(1, sub // 8):
        r = r + acc[j * 8:(j + 1) * 8, :]
    return r


def _transform_loss_kernel(za_ref, x_ref, z_ref, zh_ref, o_ref, lim_ref, wv_ref,
                           out_ref, *, sub, br, hwb, W, p, eps):
    """One parallel grid step: partial sums for a (br, hwb) row-block."""
    n_slabs = br // sub

    # Loop-invariant broadcasts (JAX does not CSE broadcast_in_dim -> hoist).
    col = lax.broadcasted_iota(jnp.int32, (1, hwb), 1)
    col_lt_1 = col < 1
    col_lt_W = col < W
    row_is_last = lax.broadcasted_iota(jnp.int32, (sub, 1), 0) == (sub - 1)
    wvalid = wv_ref[...] > 0.5                       # (1, hwb): (j % W) < W-1
    halo_row = zh_ref[0:1, :].astype(jnp.float32)    # first row of the next block

    def body(q, carry):
        acc_mse, acc_sm, acc_l1 = carry
        r0 = pl.multiple_of(q * sub, sub)

        # ---- MSE term ------------------------------------------------------
        za = za_ref[pl.ds(r0, sub), :].astype(jnp.float32)
        xx = x_ref[pl.ds(r0, sub), :].astype(jnp.float32)
        d = za - xx
        acc_mse = acc_mse + _fold_to_8x128(d * d, sub, hwb)

        # ---- L1 change term --------------------------------------------------
        zb = z_ref[pl.ds(r0, sub), :].astype(jnp.float32)
        ob = o_ref[pl.ds(r0, sub), :].astype(jnp.float32)
        acc_l1 = acc_l1 + _fold_to_8x128(jnp.abs(zb - ob), sub, hwb)

        # ---- TV smoothness term ----------------------------------------------
        # Folded layout: row = (channel, lane-chunk), column j; flat k = chunk*hwb + j.
        # Neighbours:  k+1 -> (same row, j+1)  or (next row, j+1-hwb)
        #              k+W -> (same row, j+W)  or (next row, j+W-hwb)
        nr_idx = jnp.minimum(r0 + sub, br - 1)
        nrow_blk = z_ref[pl.ds(nr_idx, 1), :].astype(jnp.float32)     # (1, hwb)
        nrow = jnp.where(q == n_slabs - 1, halo_row, nrow_blk)
        z_nr = jnp.where(row_is_last, nrow, pltpu.roll(zb, shift=sub - 1, axis=0))

        src1 = jnp.where(col_lt_1, z_nr, zb)
        zx = pltpu.roll(src1, shift=hwb - 1, axis=1)    # value at k+1
        srcW = jnp.where(col_lt_W, z_nr, zb)
        zy = pltpu.roll(srcW, shift=hwb - W, axis=1)    # value at k+W

        x_diff = zb - zx
        y_diff = zb - zy
        sq = jnp.clip(x_diff * x_diff + y_diff * y_diff, eps, 1.0e7)
        term = _pow_spec(sq, p)

        limit = lim_ref[pl.ds(r0, sub), :]                      # (sub, 1) int32
        valid = jnp.logical_and(col < limit, wvalid)            # (sub, hwb) bool
        # where (not multiply): masked lanes can hold huge term values for large beta.
        acc_sm = acc_sm + _fold_to_8x128(jnp.where(valid, term, 0.0), sub, hwb)

        return acc_mse, acc_sm, acc_l1

    zero = jnp.zeros((8, 128), jnp.float32)
    acc_mse, acc_sm, acc_l1 = lax.fori_loop(0, n_slabs, body, (zero, zero, zero))

    out_ref[0, 0, :, :] = acc_mse
    out_ref[0, 1, :, :] = acc_sm
    out_ref[0, 2, :, :] = acc_l1


def _vmem_capacity_bytes():
    try:
        return int(pltpu.get_tpu_info().vmem_capacity_bytes)
    except Exception:
        return 64 << 20  # conservative (v7x per-core physical VMEM)


def _choose_tiling(C, H, W, itemsize, vmem_cap):
    """Pick (sub, hwb, br): folded-row lane width and rows per grid block."""
    sub = {4: 8, 2: 16, 1: 32}.get(itemsize, 8)
    HW = H * W
    chunk = W * 128 // math.gcd(W, 128)                # lcm(W, 128)
    hwb = chunk * max(1, -(-1024 // chunk))            # ~>=1024 lanes per folded row
    hwb = min(hwb, chunk * (-(-HW // chunk)))          # never wider than one channel
    n_lb = -(-HW // hwb)
    rows = C * n_lb
    row_bytes = hwb * itemsize
    total_bytes = rows * row_bytes
    max_blk = (4 << 20) if vmem_cap <= (64 << 20) else (6 << 20)
    blk_target = max(min(total_bytes // 8, max_blk), 128 << 10)   # aim for >=~8 steps
    br = max(sub, (blk_target // row_bytes) // sub * sub)
    br = min(br, (-(-rows // sub)) * sub)
    return sub, hwb, br


def transform_loss(z, z_act, x, original, *, beta=2.0, reg_lambda=0.001,
                   reg_original=0.001, eps=0.001, hwb=None, br=None):
    """Pallas TPU implementation of TransformLoss.forward(z, z_act).

    z, z_act, x, original: (C, H, W) arrays. Returns (mse, smooth_loss, change_loss).
    """
    if z.ndim != 3:
        raise ValueError(f"z must be (C, H, W), got {z.shape}")
    C, H, W = z.shape
    for name, a in (("z_act", z_act), ("x", x), ("original", original)):
        if a.shape != (C, H, W):
            raise ValueError(f"{name} must have shape {(C, H, W)}, got {a.shape}")

    common = jnp.result_type(z.dtype, z_act.dtype, x.dtype, original.dtype)
    if common not in (jnp.float32, jnp.bfloat16):
        common = jnp.float32
    itemsize = jnp.dtype(common).itemsize

    vmem_cap = _vmem_capacity_bytes()
    auto_sub, auto_hwb, auto_br = _choose_tiling(C, H, W, itemsize, vmem_cap)
    sub = auto_sub
    if hwb is None:
        hwb = auto_hwb
    chunk = W * 128 // math.gcd(W, 128)
    if hwb % chunk != 0:
        raise ValueError(f"hwb={hwb} must be a multiple of lcm(W,128)={chunk}")
    HW = H * W
    n_lb = -(-HW // hwb)               # lane-chunks per channel
    HWp = n_lb * hwb
    rows = C * n_lb
    if br is None:
        br = auto_br
    if br % sub != 0:
        raise ValueError(f"br={br} must be a multiple of {sub} for dtype {common}")
    n_rb = -(-rows // br)
    rows_p = n_rb * br

    def _fold(a):                      # (C, H, W) -> folded lane-dense (rows_p, hwb)
        a2 = a.astype(common).reshape(C, HW)
        if HWp > HW:
            a2 = jnp.pad(a2, ((0, 0), (0, HWp - HW)))
        a2 = a2.reshape(rows, hwb)
        if rows_p > rows:
            a2 = jnp.pad(a2, ((0, rows_p - rows), (0, 0)))
        return a2

    za_f = _fold(z_act)
    x_f = _fold(x)
    z_f = _fold(z)
    o_f = _fold(original)

    # Per-row column limit encoding "h < H-1" (padded rows fully masked) and the
    # per-lane "w < W-1" row (hwb is a multiple of W, so j % W == k % W).
    l_of_row = np.arange(rows_p, dtype=np.int64) % max(n_lb, 1)
    limit_np = np.clip((H - 1) * W - l_of_row * hwb, 0, hwb)
    limit_np[rows:] = 0
    limit = jnp.asarray(limit_np.astype(np.int32).reshape(rows_p, 1))
    wvalid = jnp.asarray(((np.arange(hwb) % W) < (W - 1))
                         .astype(np.float32).reshape(1, hwb))

    kernel = functools.partial(
        _transform_loss_kernel,
        sub=sub, br=br, hwb=hwb, W=W, p=float(beta) / 2.0, eps=float(eps))

    blk = pl.BlockSpec((br, hwb), lambda i: (i, 0))
    halo = pl.BlockSpec(
        (sub, hwb),
        lambda i: (jnp.minimum((i + 1) * (br // sub), rows_p // sub - 1), 0))
    lim_spec = pl.BlockSpec((br, 1), lambda i: (i, 0))
    wv_spec = pl.BlockSpec((1, hwb), lambda i: (0, 0))
    out_spec = pl.BlockSpec((1, 3, 8, 128), lambda i: (i, 0, 0, 0))

    vmem_limit = min(vmem_cap * 3 // 4, 96 << 20)

    partials = pl.pallas_call(
        kernel,
        out_shape=jax.ShapeDtypeStruct((n_rb, 3, 8, 128), jnp.float32),
        grid=(n_rb,),
        in_specs=[blk, blk, blk, halo, blk, lim_spec, wv_spec],
        out_specs=out_spec,
        compiler_params=pltpu.CompilerParams(
            dimension_semantics=("parallel",),
            vmem_limit_bytes=int(vmem_limit)),
    )(za_f, x_f, z_f, z_f, o_f, limit, wvalid)

    sums = jnp.sum(partials, axis=(0, 2, 3))     # (3,) final reduction in the wrapper
    mse = sums[0]
    smooth = sums[1] * reg_lambda
    change = sums[2] * reg_original
    return mse, smooth, change


def _reference(z, z_act, x, original, beta=2.0, reg_lambda=0.001,
               reg_original=0.001, eps=0.001):
    """Pure-JAX reference matching the PyTorch module."""
    z = z.astype(jnp.float32)
    z_act = z_act.astype(jnp.float32)
    x = x.astype(jnp.float32)
    original = original.astype(jnp.float32)
    mse = jnp.sum((z_act - x) ** 2)
    x_diff = z[:, :-1, :-1] - z[:, :-1, 1:]
    y_diff = z[:, :-1, :-1] - z[:, 1:, :-1]
    sq = jnp.clip(x_diff * x_diff + y_diff * y_diff, eps, 1.0e7)
    p = beta / 2.0
    smooth = jnp.sum(jnp.abs(sq) ** p) * reg_lambda
    change = jnp.sum(jnp.abs(z - original)) * reg_original
    return mse, smooth, change


def _check(got, want, rtol=2e-4, atol=1e-3):
    for name, g, w in zip(("mse", "smooth", "change"), got, want):
        assert jnp.allclose(g, w, rtol=rtol, atol=atol), (name, float(g), float(w))


if __name__ == "__main__":
    key = jax.random.PRNGKey(0)
    ks = jax.random.split(key, 12)

    # Case 1: f32, forced small tiles -> 3 parallel row-blocks, cross-block halo used.
    C, H, W = 8, 24, 16
    z = jax.random.normal(ks[0], (C, H, W), jnp.float32)
    za = jax.random.normal(ks[1], (C, H, W), jnp.float32)
    xt = jax.random.normal(ks[2], (C, H, W), jnp.float32)
    og = jax.random.normal(ks[3], (C, H, W), jnp.float32)
    out = transform_loss(z, za, xt, og, hwb=128, br=8)
    jax.block_until_ready(out)
    ref = _reference(z, za, xt, og)
    _check(out, ref)

    # Same inputs with automatic tiling (single block) must agree.
    out = transform_loss(z, za, xt, og)
    jax.block_until_ready(out)
    _check(out, ref)

    # Case 2: spatial size not a multiple of 128 (lane + row padding), beta=4 -> p=2.
    C2, H2, W2 = 4, 10, 12
    z2 = jax.random.normal(ks[4], (C2, H2, W2), jnp.float32)
    za2 = jax.random.normal(ks[5], (C2, H2, W2), jnp.float32)
    x2 = jax.random.normal(ks[6], (C2, H2, W2), jnp.float32)
    o2 = jax.random.normal(ks[7], (C2, H2, W2), jnp.float32)
    out2 = transform_loss(z2, za2, x2, o2, beta=4.0)
    jax.block_until_ready(out2)
    _check(out2, _reference(z2, za2, x2, o2, beta=4.0))

    # Case 3: bf16 inputs stream at half HBM traffic; f32 accumulation in-kernel.
    C3, H3, W3 = 16, 24, 16
    z3 = jax.random.normal(ks[8], (C3, H3, W3), jnp.float32).astype(jnp.bfloat16)
    za3 = jax.random.normal(ks[9], (C3, H3, W3), jnp.float32).astype(jnp.bfloat16)
    x3 = jax.random.normal(ks[10], (C3, H3, W3), jnp.float32).astype(jnp.bfloat16)
    o3 = jax.random.normal(ks[11], (C3, H3, W3), jnp.float32).astype(jnp.bfloat16)
    out3 = transform_loss(z3, za3, x3, o3, hwb=128, br=16)
    jax.block_until_ready(out3)
    ref3 = _reference(z3.astype(jnp.float32), za3.astype(jnp.float32),
                      x3.astype(jnp.float32), o3.astype(jnp.float32))
    _check(out3, ref3, rtol=1e-3, atol=5e-3)

    print("KERNEL_OK")
</pallas_src>

<mosaic_0001>
module attributes {stable_mosaic.version = 11 : i64} {
  func.func @_transform_loss_kernel(%arg0: i32, %arg1: memref<8x128xf32, #tpu.memory_space<vmem>>, %arg2: memref<8x128xf32, #tpu.memory_space<vmem>>, %arg3: memref<8x128xf32, #tpu.memory_space<vmem>>, %arg4: memref<8x128xf32, #tpu.memory_space<vmem>>, %arg5: memref<8x128xf32, #tpu.memory_space<vmem>>, %arg6: memref<8x1xi32, #tpu.memory_space<vmem>>, %arg7: memref<1x128xf32, #tpu.memory_space<vmem>>, %arg8: memref<1x3x8x128xf32, #tpu.memory_space<vmem>>) attributes {dimension_semantics = [#tpu.dimension_semantics<parallel>], iteration_bounds = array<i64: 3>, scalar_prefetch = 0 : i64, scratch_operands = 0 : i64, tpu.core_type = #tpu.core_type<tc>, window_params = [{transform_indices = @transform_0, window_bounds = array<i64: 8, 128>}, {transform_indices = @transform_1, window_bounds = array<i64: 8, 128>}, {transform_indices = @transform_2, window_bounds = array<i64: 8, 128>}, {transform_indices = @transform_3, window_bounds = array<i64: 8, 128>}, {transform_indices = @transform_4, window_bounds = array<i64: 8, 128>}, {transform_indices = @transform_5, window_bounds = array<i64: 8, 1>}, {pipeline_mode = #tpu.pipeline_mode<synchronous>, transform_indices = @transform_6, window_bounds = array<i64: 1, 128>}, {transform_indices = @transform_7, window_bounds = array<i64: 1, 3, 8, 128>}]} {
    %0 = tpu.iota {dimensions = array<i32: 1>} : vector<1x128xi32>
    %c1_i32 = arith.constant 1 : i32
    %1 = vector.broadcast %c1_i32 : i32 to vector<1x128xi32>
    %2 = arith.cmpi slt, %0, %1 : vector<1x128xi32>
    %c16_i32 = arith.constant 16 : i32
    %3 = vector.broadcast %c16_i32 : i32 to vector<1x128xi32>
    %4 = arith.cmpi slt, %0, %3 : vector<1x128xi32>
    %5 = tpu.iota {dimensions = array<i32: 0>} : vector<8x1xi32>
    %c7_i32 = arith.constant 7 : i32
    %6 = vector.broadcast %c7_i32 : i32 to vector<8x1xi32>
    %7 = arith.cmpi eq, %5, %6 : vector<8x1xi32>
    %c0 = arith.constant 0 : index
    %c0_0 = arith.constant 0 : index
    %8 = vector.load %arg7[%c0, %c0_0] : memref<1x128xf32, #tpu.memory_space<vmem>>, vector<1x128xf32>
    %cst = arith.constant 5.000000e-01 : f32
    %9 = vector.broadcast %cst : f32 to vector<1x128xf32>
    %10 = arith.cmpf ogt, %8, %9 : vector<1x128xf32>
    %c0_1 = arith.constant 0 : index
    %c0_2 = arith.constant 0 : index
    %11 = vector.load %arg4[%c0_1, %c0_2] : memref<8x128xf32, #tpu.memory_space<vmem>>, vector<1x128xf32>
    %cst_3 = arith.constant 0.000000e+00 : f32
    %12 = vector.broadcast %cst_3 : f32 to vector<8x128xf32>
    %c0_i32 = arith.constant 0 : i32
    %c8_i32 = arith.constant 8 : i32
    %13 = arith.muli %c0_i32, %c8_i32 : i32
    %14 = tpu.assume_multiple %13, 8 : i32
    %15 = arith.index_cast %14 : i32 to index
    %c0_4 = arith.constant 0 : index
    %16 = vector.load %arg1[%15, %c0_4] : memref<8x128xf32, #tpu.memory_space<vmem>>, vector<8x128xf32>
    %17 = arith.index_cast %14 : i32 to index
    %c0_5 = arith.constant 0 : index
    %18 = vector.load %arg2[%17, %c0_5] : memref<8x128xf32, #tpu.memory_space<vmem>>, vector<8x128xf32>
    %19 = arith.subf %16, %18 : vector<8x128xf32>
    %20 = arith.mulf %19, %19 : vector<8x128xf32>
    %21 = arith.addf %12, %20 : vector<8x128xf32>
    %22 = arith.index_cast %14 : i32 to index
    %c0_6 = arith.constant 0 : index
    %23 = vector.load %arg3[%22, %c0_6] : memref<8x128xf32, #tpu.memory_space<vmem>>, vector<8x128xf32>
    %24 = arith.index_cast %14 : i32 to index
    %c0_7 = arith.constant 0 : index
    %25 = vector.load %arg5[%24, %c0_7] : memref<8x128xf32, #tpu.memory_space<vmem>>, vector<8x128xf32>
    %26 = arith.subf %23, %25 : vector<8x128xf32>
    %27 = math.absf %26 : vector<8x128xf32>
    %28 = arith.addf %12, %27 : vector<8x128xf32>
    %c8_i32_8 = arith.constant 8 : i32
    %29 = arith.addi %14, %c8_i32_8 : i32
    %c7_i32_9 = arith.constant 7 : i32
    %30 = arith.minsi %29, %c7_i32_9 : i32
    %31 = arith.index_cast %30 : i32 to index
    %c0_10 = arith.constant 0 : index
    %32 = vector.load %arg3[%31, %c0_10] : memref<8x128xf32, #tpu.memory_space<vmem>>, vector<1x128xf32>
    %c0_i32_11 = arith.constant 0 : i32
    %33 = arith.cmpi eq, %c0_i32, %c0_i32_11 : i32
    %34 = arith.select %33, %11, %32 : vector<1x128xf32>
    %c7_i32_12 = arith.constant 7 : i32
    %35 = tpu.dynamic_rotate %23 by %c7_i32_12 dim 0 : vector<8x128xf32>, i32 -> vector<8x128xf32>
    %36 = vector.shape_cast %7 : vector<8x1xi1> to vector<8x1xi1>
    %37 = vector.broadcast %36 : vector<8x1xi1> to vector<8x128xi1>
    %38 = vector.shape_cast %34 : vector<1x128xf32> to vector<1x128xf32>
    %39 = vector.broadcast %38 : vector<1x128xf32> to vector<8x128xf32>
    %40 = arith.select %37, %39, %35 : vector<8x128xi1>, vector<8x128xf32>
    %41 = vector.shape_cast %2 : vector<1x128xi1> to vector<1x128xi1>
    %42 = vector.broadcast %41 : vector<1x128xi1> to vector<8x128xi1>
    %43 = arith.select %42, %40, %23 : vector<8x128xi1>, vector<8x128xf32>
    %c127_i32 = arith.constant 127 : i32
    %44 = tpu.dynamic_rotate %43 by %c127_i32 dim 1 : vector<8x128xf32>, i32 -> vector<8x128xf32>
    %45 = vector.shape_cast %4 : vector<1x128xi1> to vector<1x128xi1>
    %46 = vector.broadcast %45 : vector<1x128xi1> to vector<8x128xi1>
    %47 = arith.select %46, %40, %23 : vector<8x128xi1>, vector<8x128xf32>
    %c112_i32 = arith.constant 112 : i32
    %48 = tpu.dynamic_rotate %47 by %c112_i32 dim 1 : vector<8x128xf32>, i32 -> vector<8x128xf32>
    %49 = arith.subf %23, %44 : vector<8x128xf32>
    %50 = arith.subf %23, %48 : vector<8x128xf32>
    %51 = arith.mulf %49, %49 : vector<8x128xf32>
    %52 = arith.mulf %50, %50 : vector<8x128xf32>
    %53 = arith.addf %51, %52 : vector<8x128xf32>
    %cst_13 = arith.constant 1.000000e-03 : f32
    %cst_14 = arith.constant 1.000000e+07 : f32
    %54 = vector.broadcast %cst_13 : f32 to vector<8x128xf32>
    %55 = arith.maximumf %54, %53 : vector<8x128xf32>
    %56 = vector.broadcast %cst_14 : f32 to vector<8x128xf32>
    %57 = arith.minimumf %56, %55 : vector<8x128xf32>
    %58 = arith.index_cast %14 : i32 to index
    %c0_15 = arith.constant 0 : index
    %59 = vector.load %arg6[%58, %c0_15] : memref<8x1xi32, #tpu.memory_space<vmem>>, vector<8x1xi32>
    %60 = vector.broadcast %0 : vector<1x128xi32> to vector<8x128xi32>
    %61 = vector.broadcast %59 : vector<8x1xi32> to vector<8x128xi32>
    %62 = arith.cmpi slt, %60, %61 : vector<8x128xi32>
    %63 = vector.broadcast %10 : vector<1x128xi1> to vector<8x128xi1>
    %64 = arith.andi %62, %63 : vector<8x128xi1>
    %cst_16 = arith.constant 0.000000e+00 : f32
    %65 = vector.broadcast %cst_16 : f32 to vector<8x128xf32>
    %66 = arith.select %64, %57, %65 : vector<8x128xi1>, vector<8x128xf32>
    %67 = arith.addf %12, %66 : vector<8x128xf32>
    %c1_i32_17 = arith.constant 1 : i32
    %c0_18 = arith.constant 0 : index
    %c0_19 = arith.constant 0 : index
    %c0_20 = arith.constant 0 : index
    %c0_21 = arith.constant 0 : index
    %68 = vector.load %arg8[%c0_18, %c0_19, %c0_20, %c0_21] : memref<1x3x8x128xf32, #tpu.memory_space<vmem>>, vector<1x1x8x128xf32>
    %69 = vector.shape_cast %68 : vector<1x1x8x128xf32> to vector<8x128xf32>
    %70 = vector.shape_cast %21 : vector<8x128xf32> to vector<1x1x8x128xf32>
    tpu.vector_store %arg8[%c0_18, %c0_19, %c0_20, %c0_21], %70 {strides = array<i32>} : memref<1x3x8x128xf32, #tpu.memory_space<vmem>>, vector<1x1x8x128xf32>,
    %c0_22 = arith.constant 0 : index
    %c1 = arith.constant 1 : index
    %c0_23 = arith.constant 0 : index
    %c0_24 = arith.constant 0 : index
    %71 = vector.load %arg8[%c0_22, %c1, %c0_23, %c0_24] : memref<1x3x8x128xf32, #tpu.memory_space<vmem>>, vector<1x1x8x128xf32>
    %72 = vector.shape_cast %71 : vector<1x1x8x128xf32> to vector<8x128xf32>
    %73 = vector.shape_cast %67 : vector<8x128xf32> to vector<1x1x8x128xf32>
    tpu.vector_store %arg8[%c0_22, %c1, %c0_23, %c0_24], %73 {strides = array<i32>} : memref<1x3x8x128xf32, #tpu.memory_space<vmem>>, vector<1x1x8x128xf32>,
    %c0_25 = arith.constant 0 : index
    %c2 = arith.constant 2 : index
    %c0_26 = arith.constant 0 : index
    %c0_27 = arith.constant 0 : index
    %74 = vector.load %arg8[%c0_25, %c2, %c0_26, %c0_27] : memref<1x3x8x128xf32, #tpu.memory_space<vmem>>, vector<1x1x8x128xf32>
    %75 = vector.shape_cast %74 : vector<1x1x8x128xf32> to vector<8x128xf32>
    %76 = vector.shape_cast %28 : vector<8x128xf32> to vector<1x1x8x128xf32>
    tpu.vector_store %arg8[%c0_25, %c2, %c0_26, %c0_27], %76 {strides = array<i32>} : memref<1x3x8x128xf32, #tpu.memory_space<vmem>>, vector<1x1x8x128xf32>,
    return
  }
  func.func @transform_0(%arg0: i32) -> (i32, i32) {
    %c0_i32 = arith.constant 0 : i32
    %c0_i32_0 = arith.constant 0 : i32
    return %arg0, %c0_i32 : i32, i32
  }
  func.func @transform_1(%arg0: i32) -> (i32, i32) {
    %c0_i32 = arith.constant 0 : i32
    %c0_i32_0 = arith.constant 0 : i32
    return %arg0, %c0_i32 : i32, i32
  }
  func.func @transform_2(%arg0: i32) -> (i32, i32) {
    %c0_i32 = arith.constant 0 : i32
    %c0_i32_0 = arith.constant 0 : i32
    return %arg0, %c0_i32 : i32, i32
  }
  func.func @transform_3(%arg0: i32) -> (i32, i32) {
    %c1_i32 = arith.constant 1 : i32
    %0 = arith.addi %arg0, %c1_i32 : i32
    %c1_i32_0 = arith.constant 1 : i32
    %1 = arith.muli %0, %c1_i32_0 : i32
    %c2_i32 = arith.constant 2 : i32
    %2 = arith.minsi %1, %c2_i32 : i32
    %c0_i32 = arith.constant 0 : i32
    %c0_i32_1 = arith.constant 0 : i32
    return %2, %c0_i32 : i32, i32
  }
  func.func @transform_4(%arg0: i32) -> (i32, i32) {
    %c0_i32 = arith.constant 0 : i32
    %c0_i32_0 = arith.constant 0 : i32
    return %arg0, %c0_i32 : i32, i32
  }
  func.func @transform_5(%arg0: i32) -> (i32, i32) {
    %c0_i32 = arith.constant 0 : i32
    %c0_i32_0 = arith.constant 0 : i32
    return %arg0, %c0_i32 : i32, i32
  }
  func.func @transform_6(%arg0: i32) -> (i32, i32) {
    %c0_i32 = arith.constant 0 : i32
    %c0_i32_0 = arith.constant 0 : i32
    %c0_i32_1 = arith.constant 0 : i32
    return %c0_i32, %c0_i32_0 : i32, i32
  }
  func.func @transform_7(%arg0: i32) -> (i32, i32, i32, i32) {
    %c0_i32 = arith.constant 0 : i32
    %c0_i32_0 = arith.constant 0 : i32
    %c0_i32_1 = arith.constant 0 : i32
    %c0_i32_2 = arith.constant 0 : i32
    return %arg0, %c0_i32, %c0_i32_0, %c0_i32_1 : i32, i32, i32, i32
  }
}

</mosaic_0001>

<bundles_post_ra>
// kernel: tpu_custom_call.1
= control target key start
LH: loop header
LB: loop body
LE: loop exit
PB: predicated region body
PF: predicated region fallthrough
CT: control target
= control target key end

     0   :  { %s1405_s0 = inlined_call_operand.vmem [shape: f32[24,128], index: 0, kind: input, shape index: {}]   ;;  %s1406_s1 = inlined_call_operand.hbm [shape: f32[24,128], index: 1, kind: input, shape index: {}]   ;;  %s1407_s2 = inlined_call_operand.hbm [shape: f32[24,128], index: 2, kind: input, shape index: {}]   ;;  %s1408_s3 = inlined_call_operand.hbm [shape: f32[24,128], index: 3, kind: input, shape index: {}]   ;;  %s1409_s4 = inlined_call_operand.hbm [shape: f32[24,128], index: 4, kind: input, shape index: {}]   ;;  %s1410_s5 = inlined_call_operand.vmem [shape: s32[24,1], index: 5, kind: input, shape index: {}]   ;;  %s1411_s6 = inlined_call_operand.vmem [shape: f32[1,128], index: 6, kind: input, shape index: {}]   ;;  %s1412_s7 = inlined_call_operand.hbm [shape: f32[3,3,8,128], index: 7, kind: output, shape index: {}]  }
   0x1   :  { %1428 = sst [smem:[#allocation22_spill]] %s1405_s0 }
   0x2   :  { %1429 = sst [smem:[#allocation23_spill]] %s1406_s1 }
   0x3   :  { %1430 = sst [smem:[#allocation24_spill]] %s1407_s2 }
   0x4   :  { %1431 = sst [smem:[#allocation25_spill]] %s1410_s5 }
   0x5   :  { %1432 = sst [smem:[#allocation26_spill]] %s1411_s6 }
   0x6   :  { %1433 = sst [smem:[#allocation27_spill]] %s1412_s7 }
   0x7   :  { %12 = vsyncpa [#allocation3], 0 }
   0x8   :  { %14 = vsyncpa [#allocation3 + $0x1], 0 }
   0x9   :  { %15 = vsyncpa [#allocation6], 0 }
   0xa   :  { %17 = vsyncpa [#allocation6 + $0x1], 0 }
   0xb   :  { %18 = vsyncpa [#allocation9], 0 }
   0xc   :  { %20 = vsyncpa [#allocation9 + $0x1], 0 }
   0xd   :  { %21 = vsyncpa [#allocation4], 0 }
   0xe   :  { %23 = vsyncpa [#allocation4 + $0x1], 0  ;;  %s1071_s24 = smov 0   ;;  %s1073_s25 = smov 0  }
   0xf   :  { %s1075_s26 = smov 0   ;;  %s1077_s27 = smov 0  }
  0x10   :  { %s1079_s28 = smov 0   ;;  %s1081_s29 = smov 0  }
  0x11   :  { %s1083_s30 = smov 0  }
  0x12 LB: > { %1434 = sst [smem:[#allocation16_spill]] %s1007_s27  ;;  %s1107_s8 = sadd.s32 4294967295, %s1019_s30   ;;  %s1019_s30 = sphi %s1083_s30, %s1479_s30   ;;  %s1015_s29 = sphi %s1081_s29, %s1478_s29   ;;  %s1011_s28 = sphi %s1079_s28, %s1477_s28   ;;  %s1007_s27 = sphi %s1077_s27, %s1476_s27   ;;  %s1003_s26 = sphi %s1075_s26, %s1475_s26   ;;  %s999_s25 = sphi %s1073_s25, %s1474_s25   ;;  %s995_s24 = sphi %s1071_s24, %s1473_s24  }
  0x13   : > { %1435 = sst [smem:[#allocation17_spill]] %s1015_s29  ;;  %s689_s9 = sadd.s32 4294967294, %s1019_s30  }
  0x14   : > { %p69_p0 = scmp.ne.s32.totalorder %s1015_s29, %s1011_s28  ;;  %p1418_p1 = scmp.eq.s32.totalorder %s1019_s30, 0 }
  0x15   : > { %p75_p2 = scmp.ne.s32.totalorder %s1011_s28, %s1007_s27  ;;  %p1417_p3 = scmp.eq.s32.totalorder %s1107_s8, 0 }
  0x16   : > { %p230_p4 = scmp.eq.s32.totalorder %s1107_s8, 2  ;;  %p71_p5 = por %p1418_p1, %p69_p0 }
  0x17   : > { %p236_p6 = scmp.eq.s32.totalorder %s689_s9, 2  ;;  %p1122_p7 = por %p1417_p3, %p75_p2 }
  0x18   : > { %p1126_p8 = por %p230_p4, %p69_p0  ;;  %p1416_p10 = scmp.lt.s32.totalorder %s1019_s30, 3 }
  0x19   : > { %s1436_s11 = scalar_select %p1122_p7, 1, 0 }
  0x1a   : > { %s1437_s12 = scalar_select %p1126_p8, 1, 0 }
  0x1b   : > { %p1130_p9 = por %p236_p6, %p75_p2  ;;  %s1136_s14 = sand.u32 1, %s1015_s29  }
  0x1c   : > { %1438 = sst [smem:[#allocation18_spill]] %s1437_s12  ;;  %s1139_s15 = sshll.u32 %s1136_s14, 3 }
  0x1d   : > { %s1439_s13 = scalar_select %p1130_p9, 1, 0 }
  0x1e   : > { %s1142_s16 = sshll.u32 %s1019_s30, 7  ;;  %p1146_p11 = pnand %p1416_p10, %p71_p5 }
  0x1f   : > { %1440 = sst [smem:[#allocation19_spill]] %s1439_s13  ;;  %s284_s18 = sand.u32 1, %s1019_s30  }
  0x20   : > { %s1441_s17 = scalar_select %p1146_p11, 1, 0 }
  0x21   : > { %s1442_s2 = sld [smem:[#allocation24_spill]]  ;;  %s288_s22 = scalar_lea.vmem [#allocation5], %s1139_s15 }
  0x22   : > { %s295_s23 = sshll.u32 %s288_s22, 4  ;;  %s1160_s9 = scalar_lea.sflag [#allocation6], %s284_s18  ;;  %s296_s23 = int_to_ptr.vmem [resolvable:$true] %s295_s23 }
  0x23   : > { %p1166_p2 = pneg %p1146_p11 }
  0x25   : > { %s1443_s13 = scalar_select %p1166_p2, 1, 0 }
  0x27   : > { %s1155_s21 = scalar_lea.hbm %s1442_s2, %s1142_s16  ;;  %s812_s22 = scalar_lea.hbm %s1442_s2, 384 }
  0x28   : > { %s807_s10 = scalar_lea.hbm %s1155_s21, 128  ;;  %p813_p6 = scmp.lt.s32.totalorder %s1155_s21, %s1442_s2 }
  0x29   : > { %p808_p0 = scmp.ne.s32.totalorder %s1155_s21, %s807_s10  ;;  %p814_p10 = scmp.lt.s32.totalorder %s812_s22, %s807_s10 }
  0x2b   : > { %p810_p4 = pnand %p1166_p2, %p808_p0  ;;  %p815_p3 = por %p814_p10, %p813_p6 }
  0x2d   : > { %p811_p5 = pneg %p810_p4 }
  0x2f   : > { %p816_p1 = pnand %p815_p3, %p811_p5 }
  0x31   : > { %819 = shalt.err (!%p816_p1)
}
  0x32   : > { %s820_s18 = scalar_lea.vmem %s296_s23, 128  ;;  %s1021_s12 = smov [#allocation5]  }
  0x33   : > { %p821_p12 = scmp.ne.s32.totalorder %s296_s23, %s820_s18  ;;  %s825_s6 = sshll.u32 %s1021_s12, 4  ;;  %s826_s6 = int_to_ptr.vmem [resolvable:$false] %s825_s6 }
  0x34   : > { %s827_s5 = scalar_lea.vmem %s826_s6, 256  ;;  %p828_p0 = scmp.lt.s32.totalorder %s296_s23, %s826_s6 }
  0x35   : > { %p823_p13 = pnand %p821_p12, %p1166_p2  ;;  %p829_p4 = scmp.lt.s32.totalorder %s827_s5, %s820_s18 }
  0x37   : > { %p824_p9 = pneg %p823_p13  ;;  %p830_p8 = por %p829_p4, %p828_p0 }
  0x39   : > { %p831_p7 = pnand %p830_p8, %p824_p9 }
  0x3b   : > { %834 = shalt.err (!%p831_p7)
}
  0x3c   : > { %731 = dma.hbm_to_vmem [thread:$0]  (!%p1146_p11), %s1155_s21, 128, %s296_s23, %s1160_s9  }
  0x3d   : > { %p1444_p1 = scmp.lt.s32.totalorder %s1019_s30, 4  ;;  %p1445_p3 = scmp.ge.s32.totalorder %s1019_s30, 1 }
  0x3e   : > { %s1447_s1 = sld [smem:[#allocation23_spill]]  ;;  %s270_s10 = scalar_lea.vmem [#allocation2], %s1139_s15 }
  0x3f   : > { %p1189_p10 = pnand %p1445_p3, %p1444_p1  ;;  %s277_s12 = sshll.u32 %s270_s10, 4  ;;  %s278_s12 = int_to_ptr.vmem [resolvable:$true] %s277_s12 }
  0x40   : > { %s267_s19 = scalar_lea.sflag [#allocation3], %s1136_s14 }
  0x41   : > { %s1446_s7 = scalar_select %p1189_p10, 1, 0 }
  0x44   : > { %s1197_s27 = scalar_lea.hbm %s1447_s1, %s1142_s16  ;;  %s840_s22 = scalar_lea.hbm %s1447_s1, 384 }
  0x45   : > { %s835_s20 = scalar_lea.hbm %s1197_s27, 128  ;;  %p841_p12 = scmp.lt.s32.totalorder %s1197_s27, %s1447_s1 }
  0x46   : > { %p836_p7 = scmp.ne.s32.totalorder %s1197_s27, %s835_s20  ;;  %p842_p13 = scmp.lt.s32.totalorder %s840_s22, %s835_s20 }
  0x48   : > { %p838_p8 = pnand %p836_p7, %p1166_p2  ;;  %p843_p5 = por %p842_p13, %p841_p12 }
  0x4a   : > { %p839_p9 = pneg %p838_p8 }
  0x4c   : > { %p844_p6 = pnand %p843_p5, %p839_p9 }
  0x4e   : > { %847 = shalt.err (!%p844_p6)
}
  0x4f   : > { %s848_s6 = scalar_lea.vmem %s278_s12, 128  ;;  %s1022_s10 = smov [#allocation2]  }
  0x50   : > { %p849_p0 = scmp.ne.s32.totalorder %s278_s12, %s848_s6  ;;  %s853_s2 = sshll.u32 %s1022_s10, 4  ;;  %s854_s2 = int_to_ptr.vmem [resolvable:$false] %s853_s2 }
  0x51   : > { %s855_s0 = scalar_lea.vmem %s854_s2, 256  ;;  %p856_p3 = scmp.lt.s32.totalorder %s278_s12, %s854_s2 }
  0x52   : > { %p851_p4 = pnand %p849_p0, %p1166_p2  ;;  %p857_p7 = scmp.lt.s32.totalorder %s855_s0, %s848_s6 }
  0x54   : > { %p852_p1 = pneg %p851_p4  ;;  %p858_p8 = por %p857_p7, %p856_p3 }
  0x56   : > { %p859_p10 = pnand %p858_p8, %p852_p1 }
  0x58   : > { %862 = shalt.err (!%p859_p10)
}
  0x59   : > { %728 = dma.hbm_to_vmem [thread:$0]  (!%p1146_p11), %s1197_s27, 128, %s278_s12, %s267_s19  }
  0x5a   : > { %s1218_s0 = sadd.s32 1, %s1019_s30   ;;  %s120_s2 = sadd.s32 1, %s1003_s26 }
  0x5b   : > { %s59_s20 = ssub.s32 %s1019_s30, %s1218_s0  ;;  %p112_p10 = scmp.lt.s32.totalorder %s1218_s0, 2 }
  0x5c   : > { %p60_p9 = scmp.eq.s32.totalorder %s59_s20, 0  ;;  %s114_s21 = sadd.s32 1, %s1218_s0 }
  0x5d   : > { %s113_s23 = scalar_select %p112_p10, %s1218_s0, 2 }
  0x5e   : > { %s1448_s22 = sadd.s32 1, %s1015_s29  ;;  %p115_p12 = scmp.lt.s32.totalorder %s114_s21, 2 }
  0x5f   : > { %s1229_s18 = scalar_select %p60_p9, %s1015_s29, %s1448_s22  }
  0x60   : > { %p127_p13 = scmp.ne.s32.totalorder %s1003_s26, %s999_s25  ;;  %p133_p5 = scmp.ne.s32.totalorder %s999_s25, %s995_s24 }
  0x61   : > { %1449 = sst [smem:[#allocation20_spill]] %s1229_s18  ;;  %s304_s27 = sand.u32 1, %s1003_s26  }
  0x62   : > { %s1481_s21 = smov (!%p115_p12, %s114_s21), 2  ;;  %p1450_p6 = scmp.eq.s32.totalorder %s1019_s30, 0 }
  0x63   : > { %p1451_p4 = scmp.eq.s32.totalorder %s1107_s8, 0  ;;  %s117_s19 = ssub.s32 %s113_s23, %s1481_s21 }
  0x64   : > { %p129_p0 = por %p127_p13, %p1450_p6  ;;  %s696_s5 = sshll.u32 %s304_s27, 3 }
  0x65   : > { %p1240_p1 = por %p133_p5, %p1451_p4  ;;  %p118_p3 = scmp.eq.s32.totalorder %s117_s19, 0 }
  0x66   : > { %s697_s6 = sshll.u32 %s113_s23, 7  ;;  %s306_s10 = scalar_lea.vmem [#allocation7], %s696_s5 }
  0x67   : > { %s1452_s12 = scalar_select %p1240_p1, 1, 0 }
  0x68   : > { %s316_s20 = sshll.u32 %s306_s10, 4  ;;  %s1250_s18 = scalar_lea.hbm %s1408_s3, %s697_s6  ;;  %s1252_s20 = int_to_ptr.vmem [resolvable:$true] %s316_s20 }
  0x69   : > { %s1245_s22 = scalar_select %p118_p3, %s1003_s26, %s120_s2  }
  0x6a   : > { %p1454_p7 = scmp.lt.s32.totalorder %s1019_s30, 3  ;;  %s1264_s2 = scalar_lea.hbm %s1409_s4, %s1142_s16 }
  0x6b   : > { %1453 = sst [smem:[#allocation21_spill]] %s1245_s22  ;;  %s327_s19 = scalar_lea.vmem [#allocation8], %s1139_s15 }
  0x6c   : > { %p1256_p8 = pnand %p1454_p7, %p129_p0  ;;  %s334_s1 = sshll.u32 %s327_s19, 4  ;;  %s335_s1 = int_to_ptr.vmem [resolvable:$true] %s334_s1 }
  0x6d   : > { %s863_s5 = scalar_lea.hbm %s1250_s18, 128  ;;  %s868_s24 = scalar_lea.hbm %s1408_s3, 384 }
  0x6e   : > { %p864_p10 = scmp.ne.s32.totalorder %s1250_s18, %s863_s5  ;;  %p865_p9 = pneg %p1256_p8 }
  0x6f   : > { %p869_p5 = scmp.lt.s32.totalorder %s1250_s18, %s1408_s3  ;;  %p870_p6 = scmp.lt.s32.totalorder %s868_s24, %s863_s5 }
  0x70   : > { %p866_p12 = pnand %p865_p9, %p864_p10 }
  0x71   : > { %p871_p0 = por %p870_p6, %p869_p5 }
  0x72   : > { %p867_p13 = pneg %p866_p12 }
  0x74   : > { %p872_p4 = pnand %p871_p0, %p867_p13 }
  0x76   : > { %875 = shalt.err (!%p872_p4)
}
  0x77   : > { %s876_s15 = scalar_lea.vmem %s1252_s20, 128  ;;  %s1023_s16 = smov [#allocation7]  }
  0x78   : > { %p877_p3 = scmp.ne.s32.totalorder %s1252_s20, %s876_s15  ;;  %s881_s23 = sshll.u32 %s1023_s16, 4  ;;  %s882_s23 = int_to_ptr.vmem [resolvable:$false] %s881_s23 }
  0x79   : > { %s883_s27 = scalar_lea.vmem %s882_s23, 256  ;;  %p884_p12 = scmp.lt.s32.totalorder %s1252_s20, %s882_s23 }
  0x7a   : > { %p879_p7 = pnand %p877_p3, %p865_p9  ;;  %p885_p1 = scmp.lt.s32.totalorder %s883_s27, %s876_s15 }
  0x7c   : > { %p880_p10 = pneg %p879_p7  ;;  %p886_p11 = por %p885_p1, %p884_p12 }
  0x7e   : > { %p887_p2 = pnand %p886_p11, %p880_p10 }
  0x80   : > { %890 = shalt.err (!%p887_p2)
}
  0x81   : > { %734 = dma.hbm_to_vmem [thread:$0]  (!%p1256_p8), %s1250_s18, 128, %s1252_s20, %s1160_s9  }
  0x82   : > { %s324_s29 = scalar_lea.sflag [#allocation9], %s1136_s14  ;;  %s891_s22 = scalar_lea.hbm %s1264_s2, 128 }
  0x83   : > { %p892_p9 = scmp.ne.s32.totalorder %s1264_s2, %s891_s22  ;;  %p1456_p13 = scmp.ne.s32.totalorder %s1443_s13, 0 }
  0x84   : > { %s896_s21 = scalar_lea.hbm %s1409_s4, 384  ;;  %p897_p11 = scmp.lt.s32.totalorder %s1264_s2, %s1409_s4 }
  0x85   : > { %p894_p5 = pnand %p892_p9, %p1456_p13  ;;  %p898_p2 = scmp.lt.s32.totalorder %s896_s21, %s891_s22 }
  0x87   : > { %p895_p1 = pneg %p894_p5  ;;  %p899_p6 = por %p898_p2, %p897_p11 }
  0x89   : > { %p900_p0 = pnand %p899_p6, %p895_p1 }
  0x8b   : > { %903 = shalt.err (!%p900_p0)
}
  0x8c   : > { %s904_s9 = scalar_lea.vmem %s335_s1, 128  ;;  %s1024_s14 = smov [#allocation8]  }
  0x8d   : > { %p905_p8 = scmp.ne.s32.totalorder %s335_s1, %s904_s9  ;;  %s909_s18 = sshll.u32 %s1024_s14, 4  ;;  %s910_s18 = int_to_ptr.vmem [resolvable:$false] %s909_s18 }
  0x8e   : > { %s911_s20 = scalar_lea.vmem %s910_s18, 256  ;;  %p912_p7 = scmp.lt.s32.totalorder %s335_s1, %s910_s18 }
  0x8f   : > { %p907_p4 = pnand %p905_p8, %p1456_p13  ;;  %p913_p10 = scmp.lt.s32.totalorder %s911_s20, %s904_s9 }
  0x91   : > { %p908_p3 = pneg %p907_p4  ;;  %p914_p12 = por %p913_p10, %p912_p7 }
  0x93   : > { %p915_p9 = pnand %p914_p12, %p908_p3 }
  0x95   : > { %918 = shalt.err (!%p915_p9)
}
  0x96   : > { %p1457_p5 = scmp.ne.s32.totalorder %s1441_s17, 0  ;;  %p1458_p1 = scmp.ne.s32.totalorder %s1446_s7, 0 }
  0x97   : > { %s1306_s13 = sand.u32 (!%p1458_p1), 1, %s1011_s28   ;;  %p1459_p13 = scmp.ne.s32.totalorder (!%p1458_p1), %s1436_s11, 0 }
  0x98   : > { %737 = dma.hbm_to_vmem [thread:$0]  (!%p1457_p5), %s1264_s2, 128, %s335_s1, %s324_s29  }
  0x99   : > { %350 = sbr.rel (%p1458_p1) target bundleno = 319 (0x13f), region = 48  ;;  %s1309_s24 = sshll.u32 (!%p1458_p1), %s1306_s13, 3 }
  0x9a   : > { %s353_s15 = scalar_lea.sflag (!%p1458_p1), [#allocation3], %s1306_s13  ;;  %s356_s16 = scalar_lea.vmem (!%p1458_p1), [#allocation2], %s1309_s24 }
  0x9e   : > { %974 = dma.done.wait (%p1459_p13), %s353_s15, 128  }
  0x9f   : > { %976 = vsyncadd (%p1459_p13), %s353_s15, 4294967168  ;;  %s361_s17 = sand.u32 1, %s1107_s8   ;;  %s365_s2 = scalar_lea.vmem [#allocation5], %s1309_s24 }
  0xa0   : > { %s362_s7 = scalar_lea.sflag [#allocation6], %s361_s17 }
  0xa1   : > { %978 = dma.done.wait (%p1459_p13), %s362_s7, 128  }
  0xa2   : > { %980 = vsyncadd (%p1459_p13), %s362_s7, 4294967168  ;;  %s372_s1 = sand.u32 1, %s999_s25   ;;  %p1460_p11 = scmp.ne.s32.totalorder %s1452_s12, 0 }
  0xa3   : > { %s703_s23 = sshll.u32 %s372_s1, 3 }
  0xa4   : > { %s374_s27 = scalar_lea.vmem [#allocation7], %s703_s23 }
  0xa5   : > { %982 = dma.done.wait (%p1460_p11), %s362_s7, 128  }
  0xa6   : > { %984 = vsyncadd (%p1460_p11), %s362_s7, 4294967168  ;;  %s380_s29 = scalar_lea.sflag [#allocation9], %s1306_s13  ;;  %s383_s22 = scalar_lea.vmem [#allocation8], %s1309_s24 }
  0xa7   : > { %986 = dma.done.wait (%p1459_p13), %s380_s29, 128  }
  0xa8   : > { %988 = vsyncadd (%p1459_p13), %s380_s29, 4294967168  ;;  %v448_v0 = vlaneseq  ;;  %p437_p2 = scmp.lt.s32.totalorder %s1107_s8, 2  ;;  %v1025_v1 = vmov 0   ;;  %s1461_s6 = sld [smem:[#allocation22_spill]]  ;;  %v707_v4 = vld [vmem:[%s374_s27] ss:$0 sm:$0xff] }
  0xa9   : > { %805 = vset.pattern.permute.xlu1 %v1025_v1  ;;  %806 = vset.pattern.permute.xlu0 %v1025_v1  ;;  %s1462_s11 = sld [smem:[#allocation25_spill]]  ;;  %v463_v5 = vld [vmem:[%s365_s2] sm:$0xff]  ;;  %v459_v10 = vld [vmem:[%s356_s16] sm:$0xff]  ;;  %s713_s7 = smul.u32 24, %s1306_s13 }
  0xaa   : > { %s438_s12 = scalar_select %p437_p2, %s1107_s8, 2  ;;  %v453_v2 = vshrl.u32 %v448_v0, 7  ;;  %v449_v3 = vand.u32 127, %v448_v0  ;;  %v468_v8 = vrot.slane %v463_v5, 1  ;;  %v464_v13 = vld [vmem:[%s383_s22] sm:$0xff] }
  0xab   : > { %s1463_s17 = sld [smem:[#allocation26_spill]]  ;;  %v465_v15 = vsub.f32 %v463_v5, %v464_v13  ;;  %s1026_s2 = smov 127  }
  0xac   : > { %s705_s19 = sshll.u32 %s438_s12, 3  ;;  %vm454_vm0 = vcmp.eq.s32.totalorder %v453_v2, 7  ;;  %v501_v7 = vsub.s32 0, %v453_v2  ;;  %vm450_vm1 = vcmp.lt.s32.totalorder %v449_v3, 1  ;;  %vm451_vm3 = vcmp.lt.s32.totalorder %v449_v3, 16  ;;  %s436_s24 = scalar_lea.vmem [#allocation10], %s713_s7 }
  0xad   : > { %v475_v14 = vsel %vm454_vm0, %v707_v4, %v468_v8  ;;  %v466_v20 = vand.u32 2147483647, %v465_v15  ;;  %s1027_s16 = smov 112   ;;  %s1464_s1 = sld [smem:[#allocation18_spill]] }
  0xae   : > { %s440_s10 = scalar_lea.vmem %s1461_s6, %s705_s19  ;;  %v478_v17 = vsel %vm450_vm1, %v475_v14, %v463_v5  ;;  %v483_v21 = vsel %vm451_vm3, %v475_v14, %v463_v5  ;;  %s526_s23 = sshll.u32 %s436_s24, 4  ;;  %s1349_s23 = int_to_ptr.vmem [resolvable:$true] %s526_s23 }
  0xaf   : > { %s447_s18 = scalar_lea.vmem %s1462_s11, %s705_s19  ;;  %v458_v9 = vld [vmem:[%s440_s10] sm:$0xff]  ;;  %479 = vrot.lane.b32.xlu0 %v478_v17, %s1026_s2  ;;  %709 = vst [vmem:[%s436_s24 + $0x10] sm:$0xff] %v466_v20  ;;  %s714_s27 = smul.u32 384, %s1107_s8 }
  0xb0   : > { %v493_v6 = vld [vmem:[%s447_s18] sm:$0xff]  ;;  %v460_v12 = vsub.f32 %v458_v9, %v459_v10  ;;  %s1465_s12 = sld [smem:[#allocation27_spill]]  ;;  %s513_s5 = scalar_lea.sflag [#allocation4], %s1306_s13 }
  0xb1   : > { %495 = vperm.xlu1 %805, %v493_v6   ;;  %v455_v11 = vld [vmem:[%s1463_s17] sm:$0x1]  ;;  %s919_s21 = scalar_lea.vmem %s1349_s23, 384  ;;  %s1028_s8 = smov [#allocation10]  }
  0xb2   : > { %vm456_vm2 = vcmp.gt.f32.partialorder %v455_v11, 0.5  ;;  %v461_v18 = vmul.f32 %v460_v12, %v460_v12  ;;  %p920_p6 = scmp.ne.s32.totalorder %s1349_s23, %s919_s21  ;;  %s923_s6 = sshll.u32 %s1028_s8, 4  ;;  %s924_s6 = int_to_ptr.vmem [resolvable:$false] %s923_s6 }
  0xb3   : > { %v498_v16 = vsel %vm456_vm2, 1, %v1025_v1  ;;  %484 = vrot.lane.b32.xlu0 %v483_v21, %s1027_s16  ;;  %p1466_p0 = scmp.ne.s32.totalorder %s1464_s1, 0  ;;  %s925_s10 = scalar_lea.vmem %s924_s6, 768 }
  0xb4   : > { %v502_v19 = vrot.slane %v498_v16, %v501_v7  ;;  %507 = vst [vmem:[%s436_s24] sm:$0xff] %v461_v18  ;;  %p926_p3 = scmp.lt.s32.totalorder %s1349_s23, %s924_s6  ;;  %p927_p7 = scmp.lt.s32.totalorder %s925_s10, %s919_s21 }
  0xb5   : > { %p921_p8 = pnand %p920_p6, %p1466_p0 }
  0xb6   : > { %vm503_vm5 = vcmp.eq.s32.totalorder %v502_v19, 1  ;;  %s1354_s19 = scalar_lea.hbm %s1465_s12, %s714_s27  ;;  %p928_p10 = por %p927_p7, %p926_p3 }
  0xb7   : > { %p922_p4 = pneg %p921_p8 }
  0xb9   : > { %p929_p12 = pnand %p928_p10, %p922_p4 }
 0x121   : > { %v480_v22 = vpop.permute.xlu0 %479 }
 0x122   : > { %v486_v23 = vsub.f32 %v463_v5, %v480_v22 }
 0x124   : > { %v488_v27 = vmul.f32 %v486_v23, %v486_v23 }
 0x125   : > { %v485_v24 = vpop.permute.xlu0 %484 }
 0x126   : > { %v487_v25 = vsub.f32 %v463_v5, %v485_v24 }
 0x128   : > { %v489_v28 = vmul.f32 %v487_v25, %v487_v25 }
 0x12a   : > { %v490_v29 = vadd.f32 %v489_v28, %v488_v27 }
 0x12c   : > { %v496_v26 = vpop.permute.xlu1 %495  ;;  %v491_v30 = vmax.f32 %v490_v29, 0.001 }
 0x12d   : > { %vm497_vm4 = vcmp.lt.s32.totalorder %v449_v3, %v496_v26 }
 0x12e   : > { %vm504_vm6 = vmand %vm497_vm4, %vm503_vm5  ;;  %v492_v31 = vmin.f32 %v491_v30, 10000000.0 }
 0x130   : > { %v505_v32 = vsel %vm504_vm6, %v492_v31, 0.0 }
 0x131   : > { %708 = vst [vmem:[%s436_s24 + $0x8] sm:$0xff] %v505_v32 }
 0x132   : > { %932 = shalt.err (!%p929_p12)
}
 0x133   : > { %s933_s9 = scalar_lea.hbm %s1354_s19, 384  ;;  %s937_s18 = scalar_lea.hbm %s1465_s12, 1152 }
 0x134   : > { %p934_p9 = scmp.ne.s32.totalorder %s1354_s19, %s933_s9  ;;  %p938_p13 = scmp.lt.s32.totalorder %s1354_s19, %s1465_s12 }
 0x135   : > { %p939_p11 = scmp.lt.s32.totalorder %s937_s18, %s933_s9 }
 0x136   : > { %p935_p5 = pnand %p934_p9, %p1466_p0 }
 0x137   : > { %p940_p2 = por %p939_p11, %p938_p13 }
 0x138   : > { %p936_p1 = pneg %p935_p5 }
 0x13a   : > { %p941_p6 = pnand %p940_p2, %p936_p1 }
 0x13c   : > { %944 = shalt.err (!%p941_p6)
}
 0x13d   : > { %s1029_s17 = smov 128   ;;  %s1030_s7 = smov 8  }
 0x13e   : > { %723 = dma.vmem_to_hbm [thread:$0]  (%p1466_p0), %s1349_s23, 384, %s1354_s19, %s513_s5, %s1029_s17, %s1029_s17, %s1030_s7  }
 0x13f PF: > { %s1467_s2 = sld [smem:[#allocation16_spill]]  ;;  %p743_p8 = scmp.ge.s32.totalorder %s1019_s30, 2 }
 0x140   : > { %s1468_s24 = sld [smem:[#allocation19_spill]] }
 0x145   : > { %s541_s16 = sand.u32 1, %s1467_s2  }
 0x146   : > { %p1469_p4 = scmp.ne.s32.totalorder %s1468_s24, 0  ;;  %s542_s27 = scalar_lea.sflag [#allocation4], %s541_s16 }
 0x148   : > { %p739_p3 = pnand %p743_p8, %p1469_p4 }
 0x14a   : > { %p740_p7 = pneg %p739_p3 }
 0x14c   : > { %990 = dma.done.wait (%p740_p7), %s542_s27, 384  }
 0x14d   : > { %992 = vsyncadd (%p740_p7), %s542_s27, 4294966912  ;;  %s1470_s29 = sld [smem:[#allocation21_spill]]  ;;  %p26_p0 = scmp.ge.s32.totalorder %s1218_s0, 5  }
 0x14e   : > { %s1471_s1 = sld [smem:[#allocation17_spill]]  ;;  %s1473_s24 = smov %s999_s25 }
 0x14f   : > { %s1472_s13 = sld [smem:[#allocation20_spill]]  ;;  %s1474_s25 = smov %s1003_s26 }
 0x150   : > { %s1476_s27 = smov %s1011_s28  ;;  %s1479_s30 = smov %s1218_s0 }
 0x151   :  { %28 = sbr.rel (!%p26_p0) target bundleno = 18 (0x12), region = 138 }
 0x153   : > { %s1475_s26 = smov %s1470_s29 }
 0x154   : > { %s1477_s28 = smov %s1471_s1 }
 0x155   : > { %s1478_s29 = smov %s1472_s13 }
 0x156   :  { %547 = vsyncpa [#allocation3], 1 }
 0x157   :  { %549 = vsyncpa [#allocation3 + $0x1], 1 }
 0x158   :  { %550 = vsyncpa [#allocation6], 1 }
 0x159   :  { %552 = vsyncpa [#allocation6 + $0x1], 1 }
 0x15a   :  { %553 = vsyncpa [#allocation9], 1 }
 0x15b   :  { %555 = vsyncpa [#allocation9 + $0x1], 1 }
 0x15c   :  { %556 = vsyncpa [#allocation4], 1 }
 0x15d   :  { %558 = vsyncpa [#allocation4 + $0x1], 1 }

</bundles_post_ra>
